<compile_context>
chip_gen: v6e
topology: v6e:2x2x1
jax: 0.10.0
libtpu: 0.0.40
codegen_flags: <defaults>
</compile_context>

<pallas_src>
import jax
import jax.numpy as jnp
from jax.experimental import pallas as pl
from jax.experimental.pallas import tpu as pltpu

IN_FEATURES = 200
OUT_FEATURES = 10

OUT_PAD = 128    # compute width: 128 lanes for MXU / lane-dense softmax math
OUT_STORE = 16   # store width: only the useful classes (padded 10 -> 16)
NEG_BIG = -1e30  # pad-lane bias => pad logits vanish in the softmax


def _round_up(x: int, m: int) -> int:
    return ((x + m - 1) // m) * m


def _mnist_classifier_kernel(x_ref, w_ref, b_ref, o_ref):
    # x_ref: (TB, 200) f32   w_ref: (200, 128) bf16
    # b_ref: (1, 128) f32 (lanes >= 10 are -1e30)   o_ref: (TB, 16) f32
    x = x_ref[...].astype(jnp.bfloat16)   # cast in-kernel; no extra HBM pass
    w = w_ref[...]
    b = b_ref[...]

    # Linear: bf16 operands on the MXU, f32 accumulation; bias add in f32.
    logits = jnp.dot(x, w, preferred_element_type=jnp.float32) + b

    # Numerically stable log_softmax over the last axis (f32 throughout).
    # Pad lanes hold ~-1e30: they never win the max and exp() underflows to 0,
    # so only the 10 real classes contribute to the normalizer.
    m = jnp.max(logits, axis=-1, keepdims=True)
    z = logits - m
    lse = jnp.log(jnp.sum(jnp.exp(z), axis=-1, keepdims=True))
    logp = z - lse

    # Store only the first 16 lanes (classes 0..9 + 6 pad lanes): ~8x less
    # output HBM traffic than a 128-lane f32 writeback.
    o_ref[...] = logp[:, :OUT_STORE].astype(o_ref.dtype)


def mnist_classifier_forward(x, weight, bias, *, block_b: int = 2048):
    """x: [B, 200] float32; weight: [10, 200] (PyTorch layout); bias: [10]."""
    B = x.shape[0]

    # Batch tile: multiple of 8 (f32 sublane tile), capped at block_b.
    # Double-buffered working set at TB=2048: x ~3.2 MiB + out ~0.3 MiB + W/b
    # ~0.1 MiB, comfortably under every generation's scoped-VMEM default.
    TB = min(block_b, _round_up(B, 8))
    grid_b = pl.cdiv(B, TB)   # ragged trailing block; no batch round-up to TB

    # One-time, tiny operand prep (W is 10x200): transpose, pad output lanes,
    # narrow to bf16.  Bias pad lanes carry -1e30 so they drop out of softmax.
    w_p = jnp.zeros((IN_FEATURES, OUT_PAD), jnp.bfloat16)
    w_p = w_p.at[:, :OUT_FEATURES].set(weight.T.astype(jnp.bfloat16))

    b_p = jnp.full((1, OUT_PAD), NEG_BIG, jnp.float32)
    b_p = b_p.at[0, :OUT_FEATURES].set(bias.astype(jnp.float32))

    out = pl.pallas_call(
        _mnist_classifier_kernel,
        out_shape=jax.ShapeDtypeStruct((B, OUT_STORE), jnp.float32),
        grid_spec=pl.GridSpec(
            grid=(grid_b,),
            in_specs=[
                # x streams over the batch (last block dim == full 200 cols);
                # W and bias stay VMEM-resident (constant index_map).
                pl.BlockSpec((TB, IN_FEATURES), lambda i: (i, 0)),
                pl.BlockSpec((IN_FEATURES, OUT_PAD), lambda i: (0, 0)),
                pl.BlockSpec((1, OUT_PAD), lambda i: (0, 0)),
            ],
            out_specs=pl.BlockSpec((TB, OUT_STORE), lambda i: (i, 0)),
        ),
        compiler_params=pltpu.CompilerParams(
            # Batch tiles are independent -> shard across TCs on v7x megacore.
            dimension_semantics=("parallel",),
        ),
    )(x, w_p, b_p)

    # Drop the 6 pad classes (tiny: 16 -> 10 lanes).
    return out[:, :OUT_FEATURES]


def init_params(key):
    # Deterministic init mimicking torch.nn.Linear default:
    # U(-1/sqrt(in_features), 1/sqrt(in_features))
    kw, kb = jax.random.split(key)
    bound = 1.0 / jnp.sqrt(jnp.float32(IN_FEATURES))
    weight = jax.random.uniform(
        kw, (OUT_FEATURES, IN_FEATURES), jnp.float32, -bound, bound
    )
    bias = jax.random.uniform(kb, (OUT_FEATURES,), jnp.float32, -bound, bound)
    return weight, bias


if __name__ == "__main__":
    key = jax.random.PRNGKey(0)
    k_x, k_p = jax.random.split(key)

    B = 8
    x = jax.random.normal(k_x, (B, IN_FEATURES), dtype=jnp.float32)
    weight, bias = init_params(k_p)

    out = mnist_classifier_forward(x, weight, bias)
    out = jax.block_until_ready(out)

    # Reference consistent with the bf16 MXU narrowing (f32 accumulation).
    x_bf = x.astype(jnp.bfloat16).astype(jnp.float32)
    w_bf = weight.astype(jnp.bfloat16).astype(jnp.float32)
    ref = jax.nn.log_softmax(x_bf @ w_bf.T + bias, axis=1)

    assert out.shape == (B, OUT_FEATURES)
    assert jnp.allclose(out, ref, atol=1e-4, rtol=1e-4)

    print("KERNEL_OK")
</pallas_src>

<mosaic_0001>
module attributes {stable_mosaic.version = 11 : i64} {
  func.func @_mnist_classifier_kernel(%arg0: i32, %arg1: memref<8x200xf32, #tpu.memory_space<vmem>>, %arg2: memref<200x128xbf16, #tpu.memory_space<vmem>>, %arg3: memref<1x128xf32, #tpu.memory_space<vmem>>, %arg4: memref<8x16xf32, #tpu.memory_space<vmem>>) attributes {dimension_semantics = [#tpu.dimension_semantics<parallel>], iteration_bounds = array<i64: 1>, scalar_prefetch = 0 : i64, scratch_operands = 0 : i64, tpu.core_type = #tpu.core_type<tc>, window_params = [{transform_indices = @transform_0, window_bounds = array<i64: 8, 200>}, {pipeline_mode = #tpu.pipeline_mode<synchronous>, transform_indices = @transform_1, window_bounds = array<i64: 200, 128>}, {pipeline_mode = #tpu.pipeline_mode<synchronous>, transform_indices = @transform_2, window_bounds = array<i64: 1, 128>}, {transform_indices = @transform_3, window_bounds = array<i64: 8, 16>}]} {
    %c0 = arith.constant 0 : index
    %c0_0 = arith.constant 0 : index
    %0 = vector.load %arg1[%c0, %c0_0] : memref<8x200xf32, #tpu.memory_space<vmem>>, vector<8x200xf32>
    %1 = arith.truncf %0 : vector<8x200xf32> to vector<8x200xbf16>
    %c0_1 = arith.constant 0 : index
    %c0_2 = arith.constant 0 : index
    %2 = vector.load %arg2[%c0_1, %c0_2] : memref<200x128xbf16, #tpu.memory_space<vmem>>, vector<200x128xbf16>
    %c0_3 = arith.constant 0 : index
    %c0_4 = arith.constant 0 : index
    %3 = vector.load %arg3[%c0_3, %c0_4] : memref<1x128xf32, #tpu.memory_space<vmem>>, vector<1x128xf32>
    %cst = arith.constant dense<0.000000e+00> : vector<8x128xf32>
    %4 = tpu.matmul %1, %2, %cst {dimension_numbers = #tpu.dot_dimension_numbers<[1], [0], [0], [1], [0, 0, 1, 1], [], []>} : vector<8x200xbf16>, vector<200x128xbf16>, vector<8x128xf32> -> vector<8x128xf32>
    %5 = vector.broadcast %3 : vector<1x128xf32> to vector<8x128xf32>
    %6 = arith.addf %4, %5 : vector<8x128xf32>
    %cst_5 = arith.constant dense<0xFF800000> : vector<8xf32>
    %7 = vector.multi_reduction <maximumf>, %6, %cst_5 [1] : vector<8x128xf32> to vector<8xf32>
    %8 = vector.shape_cast %7 : vector<8xf32> to vector<8x1xf32>
    %9 = vector.broadcast %8 : vector<8x1xf32> to vector<8x128xf32>
    %10 = arith.subf %6, %9 : vector<8x128xf32>
    %11 = math.exp %10 : vector<8x128xf32>
    %cst_6 = arith.constant dense<0.000000e+00> : vector<8xf32>
    %12 = vector.multi_reduction <add>, %11, %cst_6 [1] : vector<8x128xf32> to vector<8xf32>
    %13 = vector.shape_cast %12 : vector<8xf32> to vector<8x1xf32>
    %14 = math.log %13 : vector<8x1xf32>
    %15 = vector.broadcast %14 : vector<8x1xf32> to vector<8x128xf32>
    %16 = arith.subf %10, %15 : vector<8x128xf32>
    %17 = vector.extract_strided_slice %16 {offsets = [0, 0], sizes = [8, 16], strides = [1, 1]} : vector<8x128xf32> to vector<8x16xf32>
    %c0_7 = arith.constant 0 : index
    %c0_8 = arith.constant 0 : index
    %18 = vector.load %arg4[%c0_7, %c0_8] : memref<8x16xf32, #tpu.memory_space<vmem>>, vector<8x16xf32>
    tpu.vector_store %arg4[%c0_7, %c0_8], %17 {strides = array<i32>} : memref<8x16xf32, #tpu.memory_space<vmem>>, vector<8x16xf32>,
    return
  }
  func.func @transform_0(%arg0: i32) -> (i32, i32) {
    %c0_i32 = arith.constant 0 : i32
    %c0_i32_0 = arith.constant 0 : i32
    return %arg0, %c0_i32 : i32, i32
  }
  func.func @transform_1(%arg0: i32) -> (i32, i32) {
    %c0_i32 = arith.constant 0 : i32
    %c0_i32_0 = arith.constant 0 : i32
    %c0_i32_1 = arith.constant 0 : i32
    return %c0_i32, %c0_i32_0 : i32, i32
  }
  func.func @transform_2(%arg0: i32) -> (i32, i32) {
    %c0_i32 = arith.constant 0 : i32
    %c0_i32_0 = arith.constant 0 : i32
    %c0_i32_1 = arith.constant 0 : i32
    return %c0_i32, %c0_i32_0 : i32, i32
  }
  func.func @transform_3(%arg0: i32) -> (i32, i32) {
    %c0_i32 = arith.constant 0 : i32
    %c0_i32_0 = arith.constant 0 : i32
    return %arg0, %c0_i32 : i32, i32
  }
}

</mosaic_0001>

<bundles_post_ra>
// kernel: tpu_custom_call.1
= control target key start
LH: loop header
LB: loop body
LE: loop exit
PB: predicated region body
PF: predicated region fallthrough
CT: control target
= control target key end

     0   :  { %8 = vsyncpa [#allocation3], 0  ;;  %s371_s0 = inlined_call_operand.hbm [shape: f32[8,200], index: 0, kind: input, shape index: {}]   ;;  %s372_s1 = inlined_call_operand.hbm [shape: bf16[200,128], index: 1, kind: input, shape index: {}]   ;;  %s373_s2 = inlined_call_operand.vmem [shape: f32[1,128], index: 2, kind: input, shape index: {}]   ;;  %s374_s3 = inlined_call_operand.hbm [shape: f32[8,16], index: 3, kind: output, shape index: {}]  }
   0x1   :  { %9 = vsyncpa [#allocation6], 0 }
   0x2   :  { %10 = vsyncpa [#allocation4], 0  ;;  %s333_s12 = smov [#allocation2]   ;;  %s334_s14 = smov [#allocation5]  }
   0x3   :  { %s17_s13 = sshll.u32 %s333_s12, 4  ;;  %s26_s15 = sshll.u32 %s334_s14, 4  ;;  %s18_s13 = int_to_ptr.vmem [resolvable:$true] %s17_s13  ;;  %s27_s15 = int_to_ptr.vmem [resolvable:$true] %s26_s15 }
   0x4   :  { %s275_s16 = scalar_lea.vmem %s18_s13, 256  ;;  %p280_p1 = scmp.lt.s32.totalorder %s18_s13, %s18_s13 }
   0x5   :  { %p276_p0 = scmp.ne.s32.totalorder %s18_s13, %s275_s16  ;;  %p281_p2 = scmp.lt.s32.totalorder %s275_s16, %s275_s16 }
   0x7   :  { %p282_p3 = por %p281_p2, %p280_p1 }
   0x9   :  { %p283_p4 = pnand %p282_p3, %p276_p0 }
   0xb   :  { %286 = shalt.err (!%p283_p4)
}
   0xc   :  { %20 = dma.hbm_to_vmem [thread:$0]  %s371_s0, 256, %s18_s13, [#allocation3]  }
   0xd   :  { %s295_s19 = scalar_lea.vmem %s27_s15, 1600  ;;  %p300_p6 = scmp.lt.s32.totalorder %s27_s15, %s27_s15 }
   0xe   :  { %p296_p5 = scmp.ne.s32.totalorder %s27_s15, %s295_s19  ;;  %p301_p7 = scmp.lt.s32.totalorder %s295_s19, %s295_s19 }
  0x10   :  { %p302_p8 = por %p301_p7, %p300_p6 }
  0x12   :  { %p303_p9 = pnand %p302_p8, %p296_p5 }
  0x14   :  { %306 = shalt.err (!%p303_p9)
}
  0x15   :  { %s335_s20 = smov 64   ;;  %s336_s21 = smov 4  }
  0x16   :  { %32 = dma.hbm_to_vmem [thread:$0]  %s372_s1, 1600, %s27_s15, [#allocation6], %s335_s20, %s335_s20, %s336_s21  }
  0x17   :  { %327 = dma.done.wait [#allocation3], 256  }
  0x18   :  { %328 = vsyncadd [#allocation3], 4294967040 }
  0x19   :  { %329 = dma.done.wait [#allocation6], 1600  }
  0x1a   :  { %330 = vsyncadd [#allocation6], 4294965696  ;;  %v337_v0 = vmov 0   ;;  %v250_v1 = vld [vmem:[#allocation5 + $0x38] sm:$0xff]   ;;  %v251_v2 = vld [vmem:[#allocation5 + $0x30] sm:$0xff]   ;;  %vm153_vm0 = vcmask 588800  }
  0x1b   :  { %161 = vmatprep.subr.bf16.mxu0 %v337_v0  ;;  %v252_v3 = vld [vmem:[#allocation5 + $0x28] sm:$0xff]   ;;  %v253_v4 = vld [vmem:[#allocation5 + $0x20] sm:$0xff]   ;;  %v43_v5 = vld [vmem:[#allocation2 + $0x8] sm:$0xff]  ;;  %vm157_vm1 = vcmask 1043456   ;;  %s338_s24 = smov [#allocation7]   ;;  %vm211_vm2 = vcmask 130048  }
  0x1c   :  { %162 = vmatpush1.bf16.msra.mxu0 %v250_v1  ;;  %v45_v6 = vpack.c.bf16 %v43_v5, %v43_v5  ;;  %v254_v7 = vld [vmem:[#allocation5 + $0x18] sm:$0xff]   ;;  %v255_v8 = vld [vmem:[#allocation5 + $0x10] sm:$0xff]   ;;  %v256_v9 = vld [vmem:[#allocation5 + $0x8] sm:$0xff]   ;;  %s219_s25 = sshll.u32 %s338_s24, 4  ;;  %s220_s25 = int_to_ptr.vmem [resolvable:$true] %s219_s25 }
  0x1d   :  { %163 = vmatprep.subr.bf16.mxu0 %v337_v0  ;;  %v257_v10 = vld [vmem:[#allocation5] sm:$0xff]   ;;  %v259_v13 = vld [vmem:[#allocation5 + $0x58] sm:$0xff]   ;;  %v260_v14 = vld [vmem:[#allocation5 + $0x50] sm:$0xff]   ;;  %p312_p11 = scmp.lt.s32.totalorder %s220_s25, %s220_s25 }
  0x1e   :  { %243 = vmatprep.mubr.msk.bf16.mxu0 %vm153_vm0, %v45_v6  ;;  %v258_v11 = vld [vmem:[#allocation5 + $0x60] ss:$0 sps:$4 sm:$0xff]   ;;  %v261_v15 = vld [vmem:[#allocation5 + $0x48] sm:$0xff]   ;;  %v42_v17 = vld [vmem:[#allocation2] sm:$0xff] }
  0x1f   :  { %v159_v12 = vsel %vm157_vm1, %v258_v11, 0  ;;  %v262_v16 = vld [vmem:[#allocation5 + $0x40] sm:$0xff]   ;;  %v44_v18 = vpack.c.bf16 %v42_v17, %v42_v17  ;;  %v229_v19 = vld [vmem:[%s373_s2] ss:$0 sm:$0xff]  ;;  %s307_s2 = scalar_lea.vmem %s220_s25, 128 }
  0x20   :  { %164 = vmatpush1.bf16.msra.mxu0 %v251_v2  ;;  %p308_p10 = scmp.ne.s32.totalorder %s220_s25, %s307_s2  ;;  %p313_p12 = scmp.lt.s32.totalorder %s307_s2, %s307_s2 }
  0x21   :  { %165 = vmatprep.subr.bf16.mxu0 %v337_v0 }
  0x22   :  { %p314_p13 = por %p313_p12, %p312_p11 }
  0x24   :  { %166 = vmatpush1.bf16.msra.mxu0 %v252_v3  ;;  %p315_p0 = pnand %p314_p13, %p308_p10 }
  0x25   :  { %167 = vmatprep.subr.bf16.mxu0 %v337_v0 }
  0x28   :  { %168 = vmatpush1.bf16.msra.mxu0 %v253_v4 }
  0x29   :  { %169 = vmatprep.subr.bf16.mxu0 %v337_v0 }
  0x2c   :  { %170 = vmatpush1.bf16.msra.mxu0 %v254_v7 }
  0x2d   :  { %171 = vmatprep.subr.bf16.mxu0 %v337_v0 }
  0x30   :  { %172 = vmatpush1.bf16.msra.mxu0 %v255_v8 }
  0x31   :  { %173 = vmatprep.subr.bf16.mxu0 %v337_v0 }
  0x34   :  { %174 = vmatpush1.bf16.msra.mxu0 %v256_v9 }
  0x35   :  { %175 = vmatprep.subr.bf16.mxu0 %v337_v0 }
  0x38   :  { %176 = vmatpush1.bf16.msra.mxu0 %v257_v10 }
  0x39   :  { %183 = vmatprep.subr.bf16.mxu0 %v337_v0 }
  0x3c   :  { %184 = vmatpush2.bf16.msra.mxu0 %v159_v12 }
  0x3d   :  { %185 = vmatprep.subr.bf16.mxu0 %v337_v0 }
  0x40   :  { %186 = vmatpush2.bf16.msra.mxu0 %v259_v13 }
  0x41   :  { %187 = vmatprep.subr.bf16.mxu0 %v337_v0 }
  0x44   :  { %188 = vmatpush2.bf16.msra.mxu0 %v260_v14 }
  0x45   :  { %189 = vmatprep.subr.bf16.mxu0 %v337_v0 }
  0x48   :  { %190 = vmatpush2.bf16.msra.mxu0 %v261_v15 }
  0x49   :  { %191 = vmatprep.subr.bf16.mxu0 %v337_v0 }
  0x4c   :  { %192 = vmatpush2.bf16.msra.mxu0 %v262_v16 }
  0x4f   :  { %194 = vmatmul.mubr.bf16.vlgmr.msra.gmra.mxu0 %v44_v18 }
 0x10f   :  { %v195_v20 = vpop.f32.mrf.mxu0 }
 0x110   :  { %v196_v21 = vadd.f32 %v229_v19, %v195_v20 }
 0x111   :  { %v197_v22 = vpop.f32.mrf.mxu0 }
 0x112   :  { %201 = vmax.xlane.f32.xlu0 %v196_v21 }
 0x113   :  { %v198_v23 = vpop.f32.mrf.mxu0 }
 0x115   :  { %v199_v24 = vpop.f32.mrf.mxu0 }
 0x19b   :  { %v202_v25 = vpop.xlane.xlu0 %201 }
 0x19c   :  { %v203_v26 = vsub.f32 %v196_v21, %v202_v25 }
 0x19e   :  { %v204_v27 = vmul.f32 1.442695, %v203_v26 }
 0x1a0   :  { %263 = vpow2.f32 %v204_v27 }
 0x1ad   :  { %v264_v28 = vpop.eup %263 }
 0x1ae   :  { %206 = vadd.xlane.f32.xlu0 %v264_v28 }
 0x237   :  { %v207_v29 = vpop.xlane.xlu0 %206 }
 0x238   :  { %265 = vlog2.f32 %v207_v29 }
 0x245   :  { %v266_v30 = vpop.eup %265 }
 0x246   :  { %v209_v31 = vmul.f32 0.6931472, %v266_v30 }
 0x248   :  { %v210_v32 = vsub.f32 %v203_v26, %v209_v31 }
 0x24a   :  { %212 = vst.msk [vmem:[#allocation7] sm:$0xff] %vm211_vm2, %v210_v32 }
 0x24b   :  { %318 = shalt.err (!%p315_p0)
}
 0x24c   :  { %222 = dma.vmem_to_hbm [thread:$0]  %s220_s25, 128, %s374_s3, [#allocation4]  }
 0x24d   :  { %331 = dma.done.wait [#allocation4], 128  }
 0x24e   :  { %332 = vsyncadd [#allocation4], 4294967168 }
 0x24f   :  { %226 = vsyncpa [#allocation3], 1 }
 0x250   :  { %227 = vsyncpa [#allocation6], 1 }
 0x251   :  { %228 = vsyncpa [#allocation4], 1 }

</bundles_post_ra>
